<compile_context>
chip_gen: v7x
topology: tpu7x:2x2x1
jax: 0.10.0
libtpu: 0.0.40
codegen_flags: <defaults>
</compile_context>

<pallas_src>
import functools
import math

import jax
import jax.numpy as jnp
from jax.experimental import pallas as pl
from jax.experimental.pallas import tpu as pltpu  # noqa: F401  (TPU backend)

_LANES = 128

# Row offsets of each parameter block inside the packed (_ROWS, 128) slab.
_R_ALFA = 0    # rows 0..3  : alfa[k] replicated across all 128 lanes
_R_W1   = 8    # rows 8..11 : W1 (4, 10)   in lanes 0..9
_R_B1   = 16   # row  16    : b1 (10,)     in lanes 0..9
_R_W2T  = 24   # rows 24..43: W2^T (20,10) in lanes 0..9
_R_B2   = 48   # rows 48..67: b2[i] replicated across all 128 lanes
_R_W3   = 72   # rows 72..91: W3 (20, out) in lanes 0..out-1
_R_B3   = 96   # row  96    : b3 (out,)    in lanes 0..out-1
_ROWS   = 104  # multiple of 8


def _mlp_kernel(p_ref, out_ref):
    # Static sub-views of the single packed VMEM ref (no extra DMAs).
    alfa = p_ref[_R_ALFA:_R_ALFA + 8, :]     # (8, 128)
    w1   = p_ref[_R_W1:_R_W1 + 8, :]         # (8, 128)
    b1   = p_ref[_R_B1:_R_B1 + 1, :]         # (1, 128)
    w2t  = p_ref[_R_W2T:_R_W2T + 24, :]      # (24, 128)
    b2   = p_ref[_R_B2:_R_B2 + 24, :]        # (24, 128)
    w3   = p_ref[_R_W3:_R_W3 + 24, :]        # (24, 128)
    b3   = p_ref[_R_B3:_R_B3 + 1, :]         # (1, 128)

    # layer 1: (1,4) @ (4,10) + b1  -> VPU multiply + sublane reduce (XLU).
    h1 = jnp.tanh(jnp.sum(alfa * w1, axis=0, keepdims=True) + b1)        # (1,128)
    # layer 2: (1,10) @ (10,20) + b2 -> lane reduce; value replicated per row.
    h2 = jnp.tanh(jnp.sum(w2t * h1, axis=1, keepdims=True) + b2)         # (24,128)
    # layer 3: (1,20) @ (20,out) + b3 -> sublane reduce; lane-dense output row.
    out_ref[...] = jnp.tanh(jnp.sum(h2 * w3, axis=0, keepdims=True) + b3)  # (1,128)


def _pack_params(alfa, w1, b1, w2, b2, w3, b3):
    """Pack all MLP parameters into one (104, 128) f32 slab (single DMA)."""
    out_dim = w3.shape[1]
    assert out_dim <= _LANES, "nq*nl must be <= 128 for the lane-packed layout"
    p = jnp.zeros((_ROWS, _LANES), jnp.float32)
    p = p.at[_R_ALFA:_R_ALFA + 4, :].set(
        jnp.broadcast_to(alfa.reshape(4, 1), (4, _LANES)))
    p = p.at[_R_W1:_R_W1 + 4, 0:10].set(w1)                       # (4, 10)
    p = p.at[_R_B1, 0:10].set(b1.reshape(10))
    p = p.at[_R_W2T:_R_W2T + 20, 0:10].set(w2.T)                  # (20, 10)
    p = p.at[_R_B2:_R_B2 + 20, :].set(
        jnp.broadcast_to(b2.reshape(20, 1), (20, _LANES)))
    p = p.at[_R_W3:_R_W3 + 20, 0:out_dim].set(w3)                 # (20, out)
    p = p.at[_R_B3, 0:out_dim].set(b3.reshape(out_dim))
    return p


def _theta_kernel_call(packed, out_dim):
    cost = pl.CostEstimate(
        flops=2 * (4 * 10 + 10 * 20 + 20 * out_dim),
        transcendentals=10 + 20 + out_dim,
        bytes_accessed=int(packed.size) * 4 + _LANES * 4,
    )
    return pl.pallas_call(
        _mlp_kernel,
        out_shape=jax.ShapeDtypeStruct((1, _LANES), jnp.float32),
        grid=(),
        in_specs=[pl.BlockSpec((_ROWS, _LANES), lambda: (0, 0))],
        out_specs=pl.BlockSpec((1, _LANES), lambda: (0, 0)),
        cost_estimate=cost,
    )(packed)


@functools.partial(jax.jit, static_argnames=("out_dim",))
def model3_theta(alfa, w1, b1, w2, b2, w3, b3, *, out_dim):
    """theta = tanh(l3(tanh(l2(tanh(l1(alfa)))))) reshaped to (out_dim,)."""
    packed = _pack_params(alfa, w1, b1, w2, b2, w3, b3)
    out_row = _theta_kernel_call(packed, out_dim)
    return out_row[0, :out_dim]


def init_params(key, nq, nl):
    """Deterministic parameter init mirroring the PyTorch module's shapes."""
    ks = jax.random.split(key, 7)

    def linear(kw, kb, fan_in, fan_out):
        # PyTorch default Linear init: U(-1/sqrt(fan_in), 1/sqrt(fan_in)).
        bound = 1.0 / math.sqrt(fan_in)
        w = jax.random.uniform(kw, (fan_in, fan_out), jnp.float32,
                               -bound, bound)           # stored (in, out)
        b = jax.random.uniform(kb, (1, fan_out), jnp.float32, -bound, bound)
        return w, b

    # alfa ~ U(0, 2*pi), shape (1, 4)
    alfa = jax.random.uniform(ks[0], (1, 4), jnp.float32, 0.0, 2.0 * math.pi)
    w1, b1 = linear(ks[1], ks[2], 4, 10)
    w2, b2 = linear(ks[3], ks[4], 10, 20)
    w3, b3 = linear(ks[5], ks[6], 20, nq * nl)
    return alfa, w1, b1, w2, b2, w3, b3


if __name__ == "__main__":
    nq, nl = 4, 2                      # small synthetic config -> theta of size 8
    out_dim = nq * nl
    key = jax.random.PRNGKey(0)
    kparams, kx = jax.random.split(key)

    alfa, w1, b1, w2, b2, w3, b3 = init_params(kparams, nq, nl)

    # x is only consumed by the quantum node in the original module; it never
    # enters the classical MLP.
    x = jax.random.normal(kx, (2, nq), jnp.float32)

    theta = model3_theta(alfa, w1, b1, w2, b2, w3, b3, out_dim=out_dim)
    theta = jax.block_until_ready(theta)

    # Cross-check against a plain-JAX reference of the same computation.
    ref = jnp.tanh(alfa @ w1 + b1)
    ref = jnp.tanh(ref @ w2 + b2)
    ref = jnp.tanh(ref @ w3 + b3)
    ref = ref.reshape(out_dim)
    assert theta.shape == (out_dim,)
    assert jnp.allclose(theta, ref, atol=1e-5), "mismatch vs reference"

    # TODO(synk): self.qlayer(x, theta) is a PennyLane/quantum QNode with no
    # Pallas equivalent; the kernel returns the theta vector instead.
    # TODO(synk): np.savetxt checkpointing of theta is intentionally omitted.

    print("KERNEL_OK")
</pallas_src>

<mosaic_0001>
module attributes {stable_mosaic.version = 11 : i64} {
  func.func @_mlp_kernel(%arg0: memref<104x128xf32, #tpu.memory_space<vmem>>, %arg1: memref<1x128xf32, #tpu.memory_space<vmem>>) attributes {dimension_semantics = [], scalar_prefetch = 0 : i64, scratch_operands = 0 : i64, tpu.core_type = #tpu.core_type<tc>} {
    %c0 = arith.constant 0 : index
    %c0_0 = arith.constant 0 : index
    %0 = vector.load %arg0[%c0, %c0_0] : memref<104x128xf32, #tpu.memory_space<vmem>>, vector<8x128xf32>
    %c8 = arith.constant 8 : index
    %c0_1 = arith.constant 0 : index
    %1 = vector.load %arg0[%c8, %c0_1] : memref<104x128xf32, #tpu.memory_space<vmem>>, vector<8x128xf32>
    %c16 = arith.constant 16 : index
    %c0_2 = arith.constant 0 : index
    %2 = vector.load %arg0[%c16, %c0_2] : memref<104x128xf32, #tpu.memory_space<vmem>>, vector<1x128xf32>
    %c24 = arith.constant 24 : index
    %c0_3 = arith.constant 0 : index
    %3 = vector.load %arg0[%c24, %c0_3] : memref<104x128xf32, #tpu.memory_space<vmem>>, vector<24x128xf32>
    %c48 = arith.constant 48 : index
    %c0_4 = arith.constant 0 : index
    %4 = vector.load %arg0[%c48, %c0_4] : memref<104x128xf32, #tpu.memory_space<vmem>>, vector<24x128xf32>
    %c72 = arith.constant 72 : index
    %c0_5 = arith.constant 0 : index
    %5 = vector.load %arg0[%c72, %c0_5] : memref<104x128xf32, #tpu.memory_space<vmem>>, vector<24x128xf32>
    %c96 = arith.constant 96 : index
    %c0_6 = arith.constant 0 : index
    %6 = vector.load %arg0[%c96, %c0_6] : memref<104x128xf32, #tpu.memory_space<vmem>>, vector<1x128xf32>
    %7 = arith.mulf %0, %1 : vector<8x128xf32>
    %cst = arith.constant dense<0.000000e+00> : vector<128xf32>
    %8 = vector.multi_reduction <add>, %7, %cst [0] : vector<8x128xf32> to vector<128xf32>
    %9 = vector.shape_cast %8 : vector<128xf32> to vector<1x128xf32>
    %10 = arith.addf %9, %2 : vector<1x128xf32>
    %11 = math.tanh %10 : vector<1x128xf32>
    %12 = vector.broadcast %11 : vector<1x128xf32> to vector<24x128xf32>
    %13 = arith.mulf %3, %12 : vector<24x128xf32>
    %cst_7 = arith.constant dense<0.000000e+00> : vector<24xf32>
    %14 = vector.multi_reduction <add>, %13, %cst_7 [1] : vector<24x128xf32> to vector<24xf32>
    %15 = vector.shape_cast %14 : vector<24xf32> to vector<24x1xf32>
    %16 = vector.broadcast %15 : vector<24x1xf32> to vector<24x128xf32>
    %17 = arith.addf %16, %4 : vector<24x128xf32>
    %18 = math.tanh %17 : vector<24x128xf32>
    %19 = arith.mulf %18, %5 : vector<24x128xf32>
    %cst_8 = arith.constant dense<0.000000e+00> : vector<128xf32>
    %20 = vector.multi_reduction <add>, %19, %cst_8 [0] : vector<24x128xf32> to vector<128xf32>
    %21 = vector.shape_cast %20 : vector<128xf32> to vector<1x128xf32>
    %22 = arith.addf %21, %6 : vector<1x128xf32>
    %23 = math.tanh %22 : vector<1x128xf32>
    %c0_9 = arith.constant 0 : index
    %c0_10 = arith.constant 0 : index
    %24 = vector.load %arg1[%c0_9, %c0_10] : memref<1x128xf32, #tpu.memory_space<vmem>>, vector<1x128xf32>
    tpu.vector_store %arg1[%c0_9, %c0_10], %23 {strides = array<i32>} : memref<1x128xf32, #tpu.memory_space<vmem>>, vector<1x128xf32>,
    return
  }
}

</mosaic_0001>

<bundles_post_ra>
// kernel: model3_theta.1
= control target key start
LH: loop header
LB: loop body
LE: loop exit
PB: predicated region body
PF: predicated region fallthrough
CT: control target
= control target key end

     0   :  { %v30_v11 = vlaneseq  ;;  %s129_s0 = inlined_call_operand.vmem [shape: f32[104,128], index: 0, kind: input, shape index: {}]   ;;  %s130_s1 = inlined_call_operand.vmem [shape: f32[1,128], index: 1, kind: output, shape index: {}]  }
   0x1   :  { %v8_v0 = vld [vmem:[%s129_s0] sm:$0xff]  ;;  %v9_v1 = vld [vmem:[%s129_s0 + $0x8] sm:$0xff]  ;;  %v10_v8 = vld [vmem:[%s129_s0 + $0x10] sm:$0x1] }
   0x2   :  { %v21_v2 = vmul.f32 %v9_v1, %v8_v0  ;;  %v31_v12 = vshrl.u32 %v30_v11, 7  ;;  %v11_v15 = vld [vmem:[%s129_s0 + $0x18] sm:$0xff]  ;;  %v13_v16 = vld [vmem:[%s129_s0 + $0x28] sm:$0xff]  ;;  %v12_v18 = vld [vmem:[%s129_s0 + $0x20] sm:$0xff] }
   0x3   :  { %v14_v22 = vld [vmem:[%s129_s0 + $0x30] sm:$0xff]  ;;  %v16_v23 = vld [vmem:[%s129_s0 + $0x40] sm:$0xff]  ;;  %v15_v28 = vld [vmem:[%s129_s0 + $0x38] sm:$0xff] }
   0x4   :  { %v22_v3 = vrot.slane %v21_v2, 4  ;;  %v32_v13 = vsub.s32 0, %v31_v12  ;;  %v17_v33 = vld [vmem:[%s129_s0 + $0x48] sm:$0xff]  ;;  %v18_v34 = vld [vmem:[%s129_s0 + $0x50] sm:$0xff]  ;;  %v19_v35 = vld [vmem:[%s129_s0 + $0x58] sm:$0xff] }
   0x5   :  { %v20_v47 = vld [vmem:[%s129_s0 + $0x60] sm:$0x1] }
   0x6   :  { %v23_v4 = vadd.f32 %v22_v3, %v21_v2 }
   0x8   :  { %v24_v5 = vrot.slane %v23_v4, 2 }
   0xa   :  { %v25_v6 = vadd.f32 %v24_v5, %v23_v4 }
   0xc   :  { %v26_v7 = vrot.slane %v25_v6, 1 }
   0xe   :  { %v27_v9 = vadd.f32 %v26_v7, %v25_v6 }
  0x10   :  { %v28_v10 = vadd.f32 %v27_v9, %v10_v8 }
  0x12   :  { %67 = vtanh.f32 %v28_v10 }
  0x1c   :  { %v68_v14 = vpop.eup %67 }
  0x1d   :  { %v33_v17 = vrot.slane %v68_v14, %v32_v13 }
  0x1f   :  { %v34_v19 = vmul.f32 %v33_v17, %v11_v15  ;;  %v36_v20 = vmul.f32 %v33_v17, %v13_v16  ;;  %v35_v21 = vmul.f32 %v33_v17, %v12_v18 }
  0x21   :  { %37 = vadd.xlane.f32.xlu0 %v34_v19  ;;  %41 = vadd.xlane.f32.xlu1 %v36_v20 }
  0x25   :  { %39 = vadd.xlane.f32.xlu0 %v35_v21 }
  0xae   :  { %v38_v24 = vpop.xlane.xlu0 %37  ;;  %v42_v25 = vpop.xlane.xlu1 %41 }
  0xaf   :  { %v43_v26 = vadd.f32 %v38_v24, %v14_v22  ;;  %v45_v27 = vadd.f32 %v42_v25, %v16_v23 }
  0xb1   :  { %69 = vtanh.f32 %v43_v26 }
  0xb2   :  { %v40_v29 = vpop.xlane.xlu0 %39  ;;  %71 = vtanh.f32 %v45_v27 }
  0xb3   :  { %v44_v30 = vadd.f32 %v40_v29, %v15_v28 }
  0xb5   :  { %73 = vtanh.f32 %v44_v30 }
  0xbb   :  { %v70_v31 = vpop.eup %69 }
  0xbc   :  { %v72_v32 = vpop.eup %71  ;;  %v49_v37 = vmul.f32 %v70_v31, %v17_v33 }
  0xbd   :  { %v51_v39 = vmul.f32 %v72_v32, %v19_v35 }
  0xbf   :  { %v74_v36 = vpop.eup %73 }
  0xc0   :  { %v50_v38 = vmul.f32 %v74_v36, %v18_v34 }
  0xc2   :  { %v52_v40 = vadd.f32 %v50_v38, %v49_v37 }
  0xc4   :  { %v53_v41 = vadd.f32 %v52_v40, %v51_v39 }
  0xc6   :  { %v54_v42 = vrot.slane %v53_v41, 4 }
  0xc8   :  { %v55_v43 = vadd.f32 %v54_v42, %v53_v41 }
  0xca   :  { %v56_v44 = vrot.slane %v55_v43, 2 }
  0xcc   :  { %v57_v45 = vadd.f32 %v56_v44, %v55_v43 }
  0xce   :  { %v58_v46 = vrot.slane %v57_v45, 1 }
  0xd0   :  { %v59_v48 = vadd.f32 %v58_v46, %v57_v45 }
  0xd2   :  { %v60_v49 = vadd.f32 %v59_v48, %v20_v47 }
  0xd4   :  { %75 = vtanh.f32 %v60_v49 }
  0xde   :  { %v76_v50 = vpop.eup %75 }
  0xdf   :  { %62 = vst [vmem:[%s130_s1] sm:$0x1] %v76_v50 }

</bundles_post_ra>
